<compile_context>
chip_gen: v5e
topology: v5e:2x2
jax: 0.10.0
libtpu: 0.0.40
codegen_flags: <defaults>
</compile_context>

<pallas_src>
import jax
import jax.numpy as jnp
from jax.experimental import pallas as pl
from jax.experimental.pallas import tpu as pltpu


def qmodel_kernel(x_ref, w1_ref, b1_ref, w2_ref, b2_ref, w3_ref, b3_ref, o_ref):
    """Fused 3-layer MLP: relu(relu(x@W1+b1)@W2+b2)@W3+b3 on one (TB, obs) batch tile."""
    x = x_ref[...]
    h1 = jnp.maximum(
        jnp.dot(x, w1_ref[...], preferred_element_type=jnp.float32) + b1_ref[...], 0.0
    )
    h2 = jnp.maximum(
        jnp.dot(h1, w2_ref[...], preferred_element_type=jnp.float32) + b2_ref[...], 0.0
    )
    o_ref[...] = (
        jnp.dot(h2, w3_ref[...], preferred_element_type=jnp.float32) + b3_ref[...]
    )


def _round_up(v, m):
    return ((v + m - 1) // m) * m


def qmodel_forward(x, params, *, block_b=2048, min_dual_core_batch=1024):
    """Forward pass of QModel.  x: (B, obs) f32.  Returns (B, action) f32."""
    w1, b1, w2, b2, w3, b3 = params
    obs, hid = w1.shape
    A = w3.shape[1]
    B = x.shape[0]

    # --- batch tile selection ------------------------------------------------------
    B8 = _round_up(max(B, 8), 8)            # minimum sublane-aligned batch
    TB = min(_round_up(block_b, 8), B8)
    # v7x has 2 TensorCores: keep >=2 balanced grid steps on large batches so the
    # "parallel" axis can shard across them; cheap no-op concern for v5e/v6e (1 TC).
    if TB >= B8 and B8 >= min_dual_core_batch:
        TB = _round_up(B8 // 2, 8)
    B_pad = _round_up(B, TB)

    # Pad the batch only when ragged (single op; padded rows produce garbage that is
    # sliced away below -- keep that invariant).
    xp = x if B_pad == B else jnp.pad(x, ((0, B_pad - B), (0, 0)))

    full = lambda a: pl.BlockSpec(a.shape, lambda i: (0,) * a.ndim)  # VMEM-resident
    grid = (B_pad // TB,)

    out = pl.pallas_call(
        qmodel_kernel,
        out_shape=jax.ShapeDtypeStruct((B_pad, A), jnp.float32),
        grid=grid,
        in_specs=[
            pl.BlockSpec((TB, obs), lambda i: (i, 0)),  # x: tiled over batch only
            full(w1), full(b1),
            full(w2), full(b2),
            full(w3), full(b3),
        ],
        out_specs=pl.BlockSpec((TB, A), lambda i: (i, 0)),  # unpadded (TB, A) store
        compiler_params=pltpu.CompilerParams(dimension_semantics=("parallel",)),
    )(xp, w1, b1, w2, b2, w3, b3)

    return out if B_pad == B else out[:B]


def init_params(key, observation_space, hidden_space, action_space):
    # Deterministic synthetic init (shapes/semantics match QModel's nn.Linear layers).
    ks = jax.random.split(key, 6)

    def lin(kw, kb, fan_in, fan_out):
        bound = 1.0 / jnp.sqrt(fan_in)
        w = jax.random.uniform(kw, (fan_in, fan_out), jnp.float32, -bound, bound)
        b = jax.random.uniform(kb, (1, fan_out), jnp.float32, -bound, bound)
        return w, b

    w1, b1 = lin(ks[0], ks[1], observation_space, hidden_space)
    w2, b2 = lin(ks[2], ks[3], hidden_space, hidden_space)
    w3, b3 = lin(ks[4], ks[5], hidden_space, action_space)
    return (w1, b1, w2, b2, w3, b3)


def qmodel_reference(x, params):
    w1, b1, w2, b2, w3, b3 = params
    h1 = jnp.maximum(x @ w1 + b1, 0.0)
    h2 = jnp.maximum(h1 @ w2 + b2, 0.0)
    return h2 @ w3 + b3


if __name__ == "__main__":
    # LunarLander-v2: observation_space=8, action_space=4, hidden_space=64.
    observation_space, action_space, hidden_space = 8, 4, 64

    key = jax.random.PRNGKey(0)
    k_x, k_p, k_xb, k_xc = jax.random.split(key, 4)
    params = init_params(k_p, observation_space, hidden_space, action_space)

    # Small batch (typical RL act() call): single padded 8-row tile, strict tolerance.
    x_small = jax.random.normal(k_x, (2, observation_space), jnp.float32)
    out_small = jax.block_until_ready(qmodel_forward(x_small, params))
    ref_small = qmodel_reference(x_small, params)
    assert out_small.shape == (2, action_space)
    assert jnp.allclose(out_small, ref_small, atol=1e-5, rtol=1e-5)

    # Larger ragged batch with an explicit small tile: exercises the multi-step batch
    # grid (4 tiles of 256, padded 1000 -> 1024) with weights held in VMEM across steps.
    x_big = jax.random.normal(k_xb, (1000, observation_space), jnp.float32)
    out_big = jax.block_until_ready(qmodel_forward(x_big, params, block_b=256))
    ref_big = qmodel_reference(x_big, params)
    assert out_big.shape == (1000, action_space)
    assert jnp.allclose(out_big, ref_big, atol=1e-4, rtol=1e-4)

    # Default tiling on a large aligned batch: exercises the dual-TensorCore split
    # (2 balanced tiles of 1024) with no wrapper-side padding or output slicing.
    x_mid = jax.random.normal(k_xc, (2048, observation_space), jnp.float32)
    out_mid = jax.block_until_ready(qmodel_forward(x_mid, params))
    ref_mid = qmodel_reference(x_mid, params)
    assert out_mid.shape == (2048, action_space)
    assert jnp.allclose(out_mid, ref_mid, atol=1e-4, rtol=1e-4)

    print("KERNEL_OK")
</pallas_src>

<mosaic_0001>
module attributes {stable_mosaic.version = 11 : i64} {
  func.func @qmodel_kernel(%arg0: i32, %arg1: memref<8x8xf32, #tpu.memory_space<vmem>>, %arg2: memref<8x64xf32, #tpu.memory_space<vmem>>, %arg3: memref<1x64xf32, #tpu.memory_space<vmem>>, %arg4: memref<64x64xf32, #tpu.memory_space<vmem>>, %arg5: memref<1x64xf32, #tpu.memory_space<vmem>>, %arg6: memref<64x4xf32, #tpu.memory_space<vmem>>, %arg7: memref<1x4xf32, #tpu.memory_space<vmem>>, %arg8: memref<8x4xf32, #tpu.memory_space<vmem>>) attributes {dimension_semantics = [#tpu.dimension_semantics<parallel>], iteration_bounds = array<i64: 1>, scalar_prefetch = 0 : i64, scratch_operands = 0 : i64, tpu.core_type = #tpu.core_type<tc>, window_params = [{transform_indices = @transform_0, window_bounds = array<i64: 8, 8>}, {pipeline_mode = #tpu.pipeline_mode<synchronous>, transform_indices = @transform_1, window_bounds = array<i64: 8, 64>}, {pipeline_mode = #tpu.pipeline_mode<synchronous>, transform_indices = @transform_2, window_bounds = array<i64: 1, 64>}, {pipeline_mode = #tpu.pipeline_mode<synchronous>, transform_indices = @transform_3, window_bounds = array<i64: 64, 64>}, {pipeline_mode = #tpu.pipeline_mode<synchronous>, transform_indices = @transform_4, window_bounds = array<i64: 1, 64>}, {pipeline_mode = #tpu.pipeline_mode<synchronous>, transform_indices = @transform_5, window_bounds = array<i64: 64, 4>}, {pipeline_mode = #tpu.pipeline_mode<synchronous>, transform_indices = @transform_6, window_bounds = array<i64: 1, 4>}, {transform_indices = @transform_7, window_bounds = array<i64: 8, 4>}]} {
    %c0 = arith.constant 0 : index
    %c0_0 = arith.constant 0 : index
    %0 = vector.load %arg1[%c0, %c0_0] : memref<8x8xf32, #tpu.memory_space<vmem>>, vector<8x8xf32>
    %c0_1 = arith.constant 0 : index
    %c0_2 = arith.constant 0 : index
    %1 = vector.load %arg2[%c0_1, %c0_2] : memref<8x64xf32, #tpu.memory_space<vmem>>, vector<8x64xf32>
    %cst = arith.constant dense<0.000000e+00> : vector<8x64xf32>
    %2 = tpu.matmul %0, %1, %cst {dimension_numbers = #tpu.dot_dimension_numbers<[1], [0], [0], [1], [0, 0, 1, 1], [], []>} : vector<8x8xf32>, vector<8x64xf32>, vector<8x64xf32> -> vector<8x64xf32>
    %c0_3 = arith.constant 0 : index
    %c0_4 = arith.constant 0 : index
    %3 = vector.load %arg3[%c0_3, %c0_4] : memref<1x64xf32, #tpu.memory_space<vmem>>, vector<1x64xf32>
    %4 = vector.broadcast %3 : vector<1x64xf32> to vector<8x64xf32>
    %5 = arith.addf %2, %4 : vector<8x64xf32>
    %cst_5 = arith.constant 0.000000e+00 : f32
    %6 = vector.broadcast %cst_5 : f32 to vector<8x64xf32>
    %7 = arith.maximumf %5, %6 : vector<8x64xf32>
    %c0_6 = arith.constant 0 : index
    %c0_7 = arith.constant 0 : index
    %8 = vector.load %arg4[%c0_6, %c0_7] : memref<64x64xf32, #tpu.memory_space<vmem>>, vector<64x64xf32>
    %cst_8 = arith.constant dense<0.000000e+00> : vector<8x64xf32>
    %9 = tpu.matmul %7, %8, %cst_8 {dimension_numbers = #tpu.dot_dimension_numbers<[1], [0], [0], [1], [0, 0, 1, 1], [], []>} : vector<8x64xf32>, vector<64x64xf32>, vector<8x64xf32> -> vector<8x64xf32>
    %c0_9 = arith.constant 0 : index
    %c0_10 = arith.constant 0 : index
    %10 = vector.load %arg5[%c0_9, %c0_10] : memref<1x64xf32, #tpu.memory_space<vmem>>, vector<1x64xf32>
    %11 = vector.broadcast %10 : vector<1x64xf32> to vector<8x64xf32>
    %12 = arith.addf %9, %11 : vector<8x64xf32>
    %cst_11 = arith.constant 0.000000e+00 : f32
    %13 = vector.broadcast %cst_11 : f32 to vector<8x64xf32>
    %14 = arith.maximumf %12, %13 : vector<8x64xf32>
    %c0_12 = arith.constant 0 : index
    %c0_13 = arith.constant 0 : index
    %15 = vector.load %arg6[%c0_12, %c0_13] : memref<64x4xf32, #tpu.memory_space<vmem>>, vector<64x4xf32>
    %cst_14 = arith.constant dense<0.000000e+00> : vector<8x4xf32>
    %16 = tpu.matmul %14, %15, %cst_14 {dimension_numbers = #tpu.dot_dimension_numbers<[1], [0], [0], [1], [0, 0, 1, 1], [], []>} : vector<8x64xf32>, vector<64x4xf32>, vector<8x4xf32> -> vector<8x4xf32>
    %c0_15 = arith.constant 0 : index
    %c0_16 = arith.constant 0 : index
    %17 = vector.load %arg7[%c0_15, %c0_16] : memref<1x4xf32, #tpu.memory_space<vmem>>, vector<1x4xf32>
    %18 = vector.broadcast %17 : vector<1x4xf32> to vector<8x4xf32>
    %19 = arith.addf %16, %18 : vector<8x4xf32>
    %c0_17 = arith.constant 0 : index
    %c0_18 = arith.constant 0 : index
    %20 = vector.load %arg8[%c0_17, %c0_18] : memref<8x4xf32, #tpu.memory_space<vmem>>, vector<8x4xf32>
    tpu.vector_store %arg8[%c0_17, %c0_18], %19 {strides = array<i32>} : memref<8x4xf32, #tpu.memory_space<vmem>>, vector<8x4xf32>,
    return
  }
  func.func @transform_0(%arg0: i32) -> (i32, i32) {
    %c0_i32 = arith.constant 0 : i32
    %c0_i32_0 = arith.constant 0 : i32
    return %arg0, %c0_i32 : i32, i32
  }
  func.func @transform_1(%arg0: i32) -> (i32, i32) {
    %c0_i32 = arith.constant 0 : i32
    %c0_i32_0 = arith.constant 0 : i32
    %c0_i32_1 = arith.constant 0 : i32
    return %c0_i32, %c0_i32_0 : i32, i32
  }
  func.func @transform_2(%arg0: i32) -> (i32, i32) {
    %c0_i32 = arith.constant 0 : i32
    %c0_i32_0 = arith.constant 0 : i32
    %c0_i32_1 = arith.constant 0 : i32
    return %c0_i32, %c0_i32_0 : i32, i32
  }
  func.func @transform_3(%arg0: i32) -> (i32, i32) {
    %c0_i32 = arith.constant 0 : i32
    %c0_i32_0 = arith.constant 0 : i32
    %c0_i32_1 = arith.constant 0 : i32
    return %c0_i32, %c0_i32_0 : i32, i32
  }
  func.func @transform_4(%arg0: i32) -> (i32, i32) {
    %c0_i32 = arith.constant 0 : i32
    %c0_i32_0 = arith.constant 0 : i32
    %c0_i32_1 = arith.constant 0 : i32
    return %c0_i32, %c0_i32_0 : i32, i32
  }
  func.func @transform_5(%arg0: i32) -> (i32, i32) {
    %c0_i32 = arith.constant 0 : i32
    %c0_i32_0 = arith.constant 0 : i32
    %c0_i32_1 = arith.constant 0 : i32
    return %c0_i32, %c0_i32_0 : i32, i32
  }
  func.func @transform_6(%arg0: i32) -> (i32, i32) {
    %c0_i32 = arith.constant 0 : i32
    %c0_i32_0 = arith.constant 0 : i32
    %c0_i32_1 = arith.constant 0 : i32
    return %c0_i32, %c0_i32_0 : i32, i32
  }
  func.func @transform_7(%arg0: i32) -> (i32, i32) {
    %c0_i32 = arith.constant 0 : i32
    %c0_i32_0 = arith.constant 0 : i32
    return %arg0, %c0_i32 : i32, i32
  }
}

</mosaic_0001>

<bundles_post_ra>
// kernel: tpu_custom_call.1
= control target key start
LH: loop header
LB: loop body
LE: loop exit
PB: predicated region body
PF: predicated region fallthrough
CT: control target
= control target key end

     0   :  { %12 = vsyncpa [#allocation3], 0  ;;  %s333_s0 = inlined_call_operand.hbm [shape: f32[8,8], index: 0, kind: input, shape index: {}]   ;;  %s334_s1 = inlined_call_operand.hbm [shape: f32[8,64], index: 1, kind: input, shape index: {}]   ;;  %s335_s2 = inlined_call_operand.vmem [shape: f32[1,64], index: 2, kind: input, shape index: {}]   ;;  %s336_s3 = inlined_call_operand.vmem [shape: f32[64,64], index: 3, kind: input, shape index: {}]   ;;  %s337_s4 = inlined_call_operand.vmem [shape: f32[1,64], index: 4, kind: input, shape index: {}]   ;;  %s338_s5 = inlined_call_operand.vmem [shape: f32[64,4], index: 5, kind: input, shape index: {}]   ;;  %s339_s6 = inlined_call_operand.vmem [shape: f32[1,4], index: 6, kind: input, shape index: {}]   ;;  %s340_s7 = inlined_call_operand.vmem [shape: f32[8,4], index: 7, kind: output, shape index: {}]  }
   0x1   :  { %s19_s26 = sshll.u32 %s333_s0, 4  ;;  %s20_s26 = int_to_ptr.hbm [resolvable:$true] %s19_s26 }
   0x2   :  { %13 = vsyncpa [#allocation5], 0  ;;  %s225_s27 = smov [#allocation2]   ;;  %s30_s8 = sshll.u32 %s334_s1, 4  ;;  %s31_s8 = int_to_ptr.hbm [resolvable:$true] %s30_s8 }
   0x3   :  { %s21_s28 = sshll.u32 %s225_s27, 4  ;;  %s226_s9 = smov [#allocation4]   ;;  %s22_s28 = int_to_ptr.vmem [resolvable:$true] %s21_s28 }
   0x4   :  { %24 = dma.hbm_to_vmem [thread:$0]  %s20_s26, 128, %s22_s28, [#allocation3]  }
   0x5   :  { %s32_s10 = sshll.u32 %s226_s9, 4  ;;  %s33_s10 = int_to_ptr.vmem [resolvable:$true] %s32_s10 }
   0x6   :  { %35 = dma.hbm_to_vmem [thread:$0]  %s31_s8, 128, %s33_s10, [#allocation5]  }
   0x7   :  { %221 = dma.done.wait [#allocation3], 128  }
   0x8   :  { %222 = vsyncadd [#allocation3], 4294967168 }
   0x9   :  { %223 = dma.done.wait [#allocation5], 128  }
   0xa   :  { %224 = vsyncadd [#allocation5], 4294967168  ;;  %vm60_vm0 = vcmask 64512   ;;  %v55_v0 = vld [vmem:[#allocation4] sm:$0xff]  ;;  %v54_v1 = vld [vmem:[#allocation2] sm:$0xff]  ;;  %vm97_vm1 = vcmask 523264  }
   0xb   :  { %v92_v2 = vld [vmem:[%s336_s3 + $0x38] sm:$0xff]  ;;  %79 = vmatpush.msra.mxu0 %v55_v0  ;;  %v91_v3 = vld [vmem:[%s336_s3 + $0x30] sm:$0xff]  ;;  %v90_v4 = vld [vmem:[%s336_s3 + $0x28] sm:$0xff]  ;;  %vm157_vm2 = vcmask 31744  }
   0xc   :  { %109 = vmatpush.msra.mxu1 %v92_v2  ;;  %165 = vmatmul.msk.f32.vlgmr.msra.gmra.mxu0 %vm60_vm0, %v54_v1  ;;  %v89_v5 = vld [vmem:[%s336_s3 + $0x20] sm:$0xff]  ;;  %v88_v6 = vld [vmem:[%s336_s3 + $0x18] sm:$0xff]  ;;  %v87_v7 = vld [vmem:[%s336_s3 + $0x10] sm:$0xff] }
   0xd   :  { %v86_v8 = vld [vmem:[%s336_s3 + $0x8] sm:$0xff]  ;;  %v85_v9 = vld [vmem:[%s336_s3] sm:$0xff]  ;;  %v129_v10 = vld [vmem:[%s338_s5 + $0x38] sm:$0xff] }
   0xe   :  { %110 = vmatpush.msra.mxu1 %v91_v3  ;;  %v128_v11 = vld [vmem:[%s338_s5 + $0x30] sm:$0xff]  ;;  %145 = vmatpush.msra.mxu2 %v129_v10  ;;  %v127_v12 = vld [vmem:[%s338_s5 + $0x28] sm:$0xff]  ;;  %v126_v13 = vld [vmem:[%s338_s5 + $0x20] sm:$0xff] }
   0xf   :  { %v125_v14 = vld [vmem:[%s338_s5 + $0x18] sm:$0xff]  ;;  %v170_v15 = vld [vmem:[%s335_s2] ss:$0 sm:$0xff]  ;;  %v124_v19 = vld [vmem:[%s338_s5 + $0x10] sm:$0xff] }
  0x10   :  { %111 = vmatpush.msra.mxu1 %v90_v4  ;;  %146 = vmatpush.msra.mxu2 %v128_v11  ;;  %v123_v20 = vld [vmem:[%s338_s5 + $0x8] sm:$0xff]  ;;  %v122_v21 = vld [vmem:[%s338_s5] sm:$0xff] }
  0x11   :  { %v171_v22 = vld [vmem:[%s337_s4] ss:$0 sm:$0xff] }
  0x12   :  { %112 = vmatpush.msra.mxu1 %v89_v5  ;;  %147 = vmatpush.msra.mxu2 %v127_v12  ;;  %v172_v26 = vld [vmem:[%s339_s6] ss:$0 sm:$0xff] }
  0x14   :  { %113 = vmatpush.msra.mxu1 %v88_v6  ;;  %148 = vmatpush.msra.mxu2 %v126_v13 }
  0x16   :  { %114 = vmatpush.msra.mxu1 %v87_v7  ;;  %149 = vmatpush.msra.mxu2 %v125_v14 }
  0x18   :  { %115 = vmatpush.msra.mxu1 %v86_v8  ;;  %150 = vmatpush.msra.mxu2 %v124_v19 }
  0x1a   :  { %116 = vmatpush.msra.mxu1 %v85_v9  ;;  %151 = vmatpush.msra.mxu2 %v123_v20 }
  0x1c   :  { %152 = vmatpush.msra.mxu2 %v122_v21 }
  0x89   :  { %v81_v16 = vpop.f32.mrf.mxu0 }
  0x8a   :  { %v82_v17 = vadd.f32 %v170_v15, %v81_v16 }
  0x8c   :  { %v84_v18 = vmax.f32 %v82_v17, 0.0 }
  0x8e   :  { %166 = vmatmul.msk.f32.vlgmr.msra.gmra.mxu1 %vm97_vm1, %v84_v18 }
 0x10b   :  { %v118_v23 = vpop.f32.mrf.mxu1 }
 0x10c   :  { %v119_v24 = vadd.f32 %v171_v22, %v118_v23 }
 0x10e   :  { %v121_v25 = vmax.f32 %v119_v24, 0.0 }
 0x110   :  { %167 = vmatmul.msk.f32.vlgmr.msra.gmra.mxu2 %vm97_vm1, %v121_v25 }
 0x193   :  { %v154_v27 = vpop.f32.mrf.mxu2 }
 0x194   :  { %v155_v28 = vadd.f32 %v172_v26, %v154_v27 }
 0x196   :  { %158 = vst.msk [vmem:[%s340_s7] sm:$0xff] %vm157_vm2, %v155_v28 }
 0x197   :  { %163 = vsyncpa [#allocation3], 1 }
 0x198   :  { %164 = vsyncpa [#allocation5], 1 }

</bundles_post_ra>
